<compile_context>
chip_gen: v7x
topology: tpu7x:2x2x1
jax: 0.10.0
libtpu: 0.0.40
codegen_flags: <defaults>
</compile_context>

<pallas_src>
import functools

import jax
import jax.numpy as jnp
from jax.experimental import pallas as pl
from jax.experimental.pallas import tpu as pltpu

_LANE = 128


def _round_up(v, m):
    return ((v + m - 1) // m) * m


def _mlp_kernel(*refs, num_layers, sigmoid_output):
    # refs = (x_ref, w1, b1, w2, b2, ..., wL, bL, o_ref); x_ref is (C_in, tile_n) bf16.
    x_ref = refs[0]
    o_ref = refs[-1]
    param_refs = refs[1:-1]

    h = x_ref[...]                                   # (C_in, tile_n), bf16
    for i in range(num_layers):
        w = param_refs[2 * i][...]                   # (out_i, in_i), bf16 (MXU LHS)
        b = param_refs[2 * i + 1][...]               # (out_i, 1), f32
        h_bf16 = h if h.dtype == jnp.bfloat16 else h.astype(jnp.bfloat16)
        # nn.Linear in the feature-major view: y = W x + b.
        # bf16 MXU inputs, f32 accumulation, f32 epilogue (VPU/EUP filler under DMA).
        h = jnp.dot(w, h_bf16, preferred_element_type=jnp.float32) + b
        if i < num_layers - 1:
            h = jnp.maximum(h, 0.0)                  # F.relu
        # TODO(synk): self.dropout is identity at eval / p=0.0; training-mode
        # dropout would need pltpu.prng_seed / prng_random_bits.
    if sigmoid_output:
        h = jax.nn.sigmoid(h)                        # EUP, f32
    o_ref[...] = h.astype(o_ref.dtype)


def _tpu_vmem_plan():
    """Return (vmem_limit_bytes, max_tile_n) for the current TPU generation."""
    phys = None
    kind = ""
    try:
        phys = int(pltpu.get_tpu_info().vmem_capacity_bytes)
    except Exception:
        phys = None
    try:
        kind = jax.devices()[0].device_kind.lower()
    except Exception:
        kind = ""
    if (phys is not None and phys <= (64 << 20)) or "v7" in kind:
        # v7x: 64 MiB physical per TC; leave headroom, push tokens/step high.
        return 44 << 20, 65536
    if "v5" in kind:
        # v5e: ~0.82 TB/s HBM, 8-16k tokens/step already reaches roofline.
        return 48 << 20, 16384
    if "v6" in kind:
        return 64 << 20, 32768
    # Unknown / other generation: conservative budget.
    return 32 << 20, 16384


def token_mlp_head_forward(x, weights, biases, *, sigmoid_output=False,
                           tile_n=None, out_dtype=jnp.float32,
                           feature_major_io=False):
    """TokenMLPHead forward.

    feature_major_io=False (default, module contract):
        x: (..., input_dim) -> (..., output_dim)
    feature_major_io=True (no wrapper transposes, for feature-major producers):
        x: (input_dim, N)   -> (output_dim, N)

    weights[i]: (out_i, in_i)  (nn.Linear storage);  biases[i]: (out_i,)
    """
    num_layers = len(weights)
    input_dim = int(weights[0].shape[1])
    output_dim = int(weights[-1].shape[0])
    out_itemsize = jnp.dtype(out_dtype).itemsize

    if feature_major_io:
        xt = x.reshape(input_dim, -1)
        if xt.dtype != jnp.bfloat16:
            xt = xt.astype(jnp.bfloat16)
        lead_shape = None
    else:
        lead_shape = x.shape[:-1]
        x2d = x.reshape(-1, input_dim)
        # Fold the bf16 MXU cast into the transpose: one fused XLA pass, half the
        # transpose HBM write and half the per-step x DMA.
        xt = x2d.astype(jnp.bfloat16).T              # (C_in, N), bf16

    n = xt.shape[-1]

    # ---- tile_n from a per-generation VMEM budget ---------------------------
    vmem_limit, max_tile = _tpu_vmem_plan()
    dims = [input_dim] + [int(w.shape[0]) for w in weights]
    max_dim = max(dims)
    if tile_n is None:
        # Per-token VMEM footprint: triple-buffered bf16 x stream, double-buffered
        # output, plus f32 activation + bf16 copy temporaries for the widest layer.
        per_token = (3 * input_dim * 2
                     + 2 * output_dim * out_itemsize
                     + 2 * max_dim * (4 + 2))
        tile_budget = vmem_limit // 2                # keep footprint under ~half the limit
        tile_n = max(_LANE, (tile_budget // per_token) // _LANE * _LANE)
        tile_n = min(tile_n, max_tile)
    else:
        tile_n = max(_LANE, (int(tile_n) // _LANE) * _LANE)

    # Don't pad tiny inputs up to a huge tile, and keep >= 2 grid steps for
    # decent-sized N so both TensorCores get token blocks on megacore parts.
    tile_n = min(tile_n, _round_up(n, _LANE))
    if n >= 2 * _LANE:
        tile_n = min(tile_n, _round_up(pl.cdiv(n, 2), _LANE))

    n_pad = _round_up(n, tile_n)
    steps = n_pad // tile_n
    grid = (steps,)

    if n_pad != n:
        # Explicit zero pad: padded columns stay finite through bias/ReLU/sigmoid
        # and are sliced off below (never rely on OOB block reads here).
        xt = jnp.pad(xt, ((0, 0), (0, n_pad - n)))

    # ---- BlockSpecs ----------------------------------------------------------
    use_deep_buffer = steps >= 3
    try:
        if use_deep_buffer:
            x_spec = pl.BlockSpec((input_dim, tile_n), lambda i: (0, i),
                                  pipeline_mode=pl.Buffered(3))
        else:
            x_spec = pl.BlockSpec((input_dim, tile_n), lambda i: (0, i))
    except TypeError:
        x_spec = pl.BlockSpec((input_dim, tile_n), lambda i: (0, i))

    in_specs = [x_spec]
    params = []
    for w, b in zip(weights, biases):
        w_bf16 = w.astype(jnp.bfloat16)              # resident MXU LHS
        b_col = b.reshape(-1, 1).astype(jnp.float32)
        in_specs.append(pl.BlockSpec(w_bf16.shape, lambda i: (0, 0)))
        in_specs.append(pl.BlockSpec(b_col.shape, lambda i: (0, 0)))
        params.append(w_bf16)
        params.append(b_col)

    flops = 2 * n_pad * sum(int(w.shape[0]) * int(w.shape[1]) for w in weights)
    transcendentals = n_pad * output_dim if sigmoid_output else 0
    bytes_accessed = int(
        input_dim * n_pad * 2                        # bf16 x stream
        + output_dim * n_pad * out_itemsize          # output stream
        + sum(int(w.size) * 2 + int(b.size) * 4 for w, b in zip(weights, biases)))

    kernel = functools.partial(
        _mlp_kernel, num_layers=num_layers, sigmoid_output=sigmoid_output)

    out_t = pl.pallas_call(
        kernel,
        out_shape=jax.ShapeDtypeStruct((output_dim, n_pad), out_dtype),
        grid_spec=pltpu.PrefetchScalarGridSpec(
            num_scalar_prefetch=0,
            grid=grid,
            in_specs=in_specs,
            out_specs=pl.BlockSpec((output_dim, tile_n), lambda i: (0, i)),
        ),
        compiler_params=pltpu.CompilerParams(
            dimension_semantics=("parallel",),
            vmem_limit_bytes=int(vmem_limit)),
        cost_estimate=pl.CostEstimate(
            flops=flops,
            transcendentals=transcendentals,
            bytes_accessed=bytes_accessed),
    )(xt, *params)

    if feature_major_io:
        return out_t[:, :n]                          # (output_dim, N)
    out = out_t[:, :n].T                             # back to tokens-first
    return out.reshape(*lead_shape, output_dim)


def make_params(input_dim, hidden_dim, output_dim, num_layers, key):
    """Deterministic init of the nn.ModuleList of Linear layers (nn.Linear layout)."""
    h = [hidden_dim] * (num_layers - 1)
    in_dims = [input_dim] + h
    out_dims = h + [output_dim]
    weights, biases = [], []
    for n_in, n_out in zip(in_dims, out_dims):
        key, kw, kb = jax.random.split(key, 3)
        bound = 1.0 / jnp.sqrt(n_in)
        w = jax.random.uniform(kw, (n_out, n_in), jnp.float32, -bound, bound)
        b = jax.random.uniform(kb, (n_out,), jnp.float32, -bound, bound)
        weights.append(w)
        biases.append(b)
    return weights, biases


def reference_forward(x, weights, biases, sigmoid_output=False, emulate_bf16=False):
    """Pure-JAX reference.  emulate_bf16=True mirrors the kernel's bf16-MXU /
    f32-accumulate numerics; False is the original @force_fp32 module math."""
    h = x.reshape(-1, weights[0].shape[1]).astype(jnp.float32)
    for i, (w, b) in enumerate(zip(weights, biases)):
        if emulate_bf16:
            h = jnp.dot(h.astype(jnp.bfloat16), w.T.astype(jnp.bfloat16),
                        preferred_element_type=jnp.float32) + b
        else:
            h = h @ w.T + b
        if i < len(weights) - 1:
            h = jnp.maximum(h, 0.0)
    if sigmoid_output:
        h = jax.nn.sigmoid(h)
    return h.reshape(*x.shape[:-1], weights[-1].shape[0])


if __name__ == "__main__":
    # TokenMLPHead(input_dim=16, hidden_dim=32, output_dim=4, num_layers=3)
    B, S = 2, 8
    input_dim, hidden_dim, output_dim, num_layers = 16, 32, 4, 3

    key = jax.random.PRNGKey(0)
    key, kx = jax.random.split(key)
    x = jax.random.normal(kx, (B, S, input_dim), jnp.float32)

    weights, biases = make_params(input_dim, hidden_dim, output_dim, num_layers, key)

    for sig in (False, True):
        out = token_mlp_head_forward(x, weights, biases, sigmoid_output=sig)
        out = jax.block_until_ready(out)
        assert out.shape == (B, S, output_dim)

        # Tight check vs a reference that mirrors the kernel's bf16-MXU numerics.
        ref_bf16 = reference_forward(x, weights, biases, sigmoid_output=sig,
                                     emulate_bf16=True)
        assert jnp.allclose(out, ref_bf16, atol=2e-3, rtol=2e-3), \
            "mismatch vs bf16-emulating reference"

        # Loose sanity check vs the original f32 @force_fp32 module semantics.
        ref_f32 = reference_forward(x, weights, biases, sigmoid_output=sig,
                                    emulate_bf16=False)
        assert jnp.allclose(out, ref_f32, atol=1e-1), \
            "mismatch vs f32 reference"

    # Feature-major I/O path (no wrapper transposes) must agree with the default path.
    x2d = x.reshape(-1, input_dim)
    out_fm = token_mlp_head_forward(x2d.T, weights, biases, sigmoid_output=False,
                                    feature_major_io=True)
    out_fm = jax.block_until_ready(out_fm)
    out_tok = token_mlp_head_forward(x, weights, biases, sigmoid_output=False)
    assert out_fm.shape == (output_dim, B * S)
    assert jnp.allclose(out_fm, out_tok.reshape(-1, output_dim).T, atol=1e-5), \
        "feature-major path mismatch"

    print("KERNEL_OK")
</pallas_src>

<mosaic_0001>
module attributes {stable_mosaic.version = 11 : i64} {
  func.func @_mlp_kernel(%arg0: i32, %arg1: memref<16x128xbf16, #tpu.memory_space<vmem>>, %arg2: memref<32x16xbf16, #tpu.memory_space<vmem>>, %arg3: memref<32x1xf32, #tpu.memory_space<vmem>>, %arg4: memref<32x32xbf16, #tpu.memory_space<vmem>>, %arg5: memref<32x1xf32, #tpu.memory_space<vmem>>, %arg6: memref<4x32xbf16, #tpu.memory_space<vmem>>, %arg7: memref<4x1xf32, #tpu.memory_space<vmem>>, %arg8: memref<4x128xf32, #tpu.memory_space<vmem>>) attributes {dimension_semantics = [#tpu.dimension_semantics<parallel>], iteration_bounds = array<i64: 1>, scalar_prefetch = 0 : i64, scratch_operands = 0 : i64, tpu.core_type = #tpu.core_type<tc>, window_params = [{transform_indices = @transform_0, window_bounds = array<i64: 16, 128>}, {pipeline_mode = #tpu.pipeline_mode<synchronous>, transform_indices = @transform_1, window_bounds = array<i64: 32, 16>}, {pipeline_mode = #tpu.pipeline_mode<synchronous>, transform_indices = @transform_2, window_bounds = array<i64: 32, 1>}, {pipeline_mode = #tpu.pipeline_mode<synchronous>, transform_indices = @transform_3, window_bounds = array<i64: 32, 32>}, {pipeline_mode = #tpu.pipeline_mode<synchronous>, transform_indices = @transform_4, window_bounds = array<i64: 32, 1>}, {pipeline_mode = #tpu.pipeline_mode<synchronous>, transform_indices = @transform_5, window_bounds = array<i64: 4, 32>}, {pipeline_mode = #tpu.pipeline_mode<synchronous>, transform_indices = @transform_6, window_bounds = array<i64: 4, 1>}, {transform_indices = @transform_7, window_bounds = array<i64: 4, 128>}]} {
    %c0 = arith.constant 0 : index
    %c0_0 = arith.constant 0 : index
    %0 = vector.load %arg1[%c0, %c0_0] : memref<16x128xbf16, #tpu.memory_space<vmem>>, vector<16x128xbf16>
    %c0_1 = arith.constant 0 : index
    %c0_2 = arith.constant 0 : index
    %1 = vector.load %arg2[%c0_1, %c0_2] : memref<32x16xbf16, #tpu.memory_space<vmem>>, vector<32x16xbf16>
    %c0_3 = arith.constant 0 : index
    %c0_4 = arith.constant 0 : index
    %2 = vector.load %arg3[%c0_3, %c0_4] : memref<32x1xf32, #tpu.memory_space<vmem>>, vector<32x1xf32>
    %cst = arith.constant dense<0.000000e+00> : vector<32x128xf32>
    %3 = tpu.matmul %1, %0, %cst {dimension_numbers = #tpu.dot_dimension_numbers<[1], [0], [0], [1], [0, 0, 1, 1], [], []>} : vector<32x16xbf16>, vector<16x128xbf16>, vector<32x128xf32> -> vector<32x128xf32>
    %4 = vector.broadcast %2 : vector<32x1xf32> to vector<32x128xf32>
    %5 = arith.addf %3, %4 : vector<32x128xf32>
    %cst_5 = arith.constant 0.000000e+00 : f32
    %6 = vector.broadcast %cst_5 : f32 to vector<32x128xf32>
    %7 = arith.maximumf %5, %6 : vector<32x128xf32>
    %c0_6 = arith.constant 0 : index
    %c0_7 = arith.constant 0 : index
    %8 = vector.load %arg4[%c0_6, %c0_7] : memref<32x32xbf16, #tpu.memory_space<vmem>>, vector<32x32xbf16>
    %c0_8 = arith.constant 0 : index
    %c0_9 = arith.constant 0 : index
    %9 = vector.load %arg5[%c0_8, %c0_9] : memref<32x1xf32, #tpu.memory_space<vmem>>, vector<32x1xf32>
    %10 = arith.truncf %7 : vector<32x128xf32> to vector<32x128xbf16>
    %cst_10 = arith.constant dense<0.000000e+00> : vector<32x128xf32>
    %11 = tpu.matmul %8, %10, %cst_10 {dimension_numbers = #tpu.dot_dimension_numbers<[1], [0], [0], [1], [0, 0, 1, 1], [], []>} : vector<32x32xbf16>, vector<32x128xbf16>, vector<32x128xf32> -> vector<32x128xf32>
    %12 = vector.broadcast %9 : vector<32x1xf32> to vector<32x128xf32>
    %13 = arith.addf %11, %12 : vector<32x128xf32>
    %cst_11 = arith.constant 0.000000e+00 : f32
    %14 = vector.broadcast %cst_11 : f32 to vector<32x128xf32>
    %15 = arith.maximumf %13, %14 : vector<32x128xf32>
    %c0_12 = arith.constant 0 : index
    %c0_13 = arith.constant 0 : index
    %16 = vector.load %arg6[%c0_12, %c0_13] : memref<4x32xbf16, #tpu.memory_space<vmem>>, vector<4x32xbf16>
    %c0_14 = arith.constant 0 : index
    %c0_15 = arith.constant 0 : index
    %17 = vector.load %arg7[%c0_14, %c0_15] : memref<4x1xf32, #tpu.memory_space<vmem>>, vector<4x1xf32>
    %18 = arith.truncf %15 : vector<32x128xf32> to vector<32x128xbf16>
    %cst_16 = arith.constant dense<0.000000e+00> : vector<4x128xf32>
    %19 = tpu.matmul %16, %18, %cst_16 {dimension_numbers = #tpu.dot_dimension_numbers<[1], [0], [0], [1], [0, 0, 1, 1], [], []>} : vector<4x32xbf16>, vector<32x128xbf16>, vector<4x128xf32> -> vector<4x128xf32>
    %20 = vector.broadcast %17 : vector<4x1xf32> to vector<4x128xf32>
    %21 = arith.addf %19, %20 : vector<4x128xf32>
    %c0_17 = arith.constant 0 : index
    %c0_18 = arith.constant 0 : index
    %22 = vector.load %arg8[%c0_17, %c0_18] : memref<4x128xf32, #tpu.memory_space<vmem>>, vector<4x128xf32>
    tpu.vector_store %arg8[%c0_17, %c0_18], %21 {strides = array<i32>} : memref<4x128xf32, #tpu.memory_space<vmem>>, vector<4x128xf32>,
    return
  }
  func.func @transform_0(%arg0: i32) -> (i32, i32) {
    %c0_i32 = arith.constant 0 : i32
    %c0_i32_0 = arith.constant 0 : i32
    return %c0_i32, %arg0 : i32, i32
  }
  func.func @transform_1(%arg0: i32) -> (i32, i32) {
    %c0_i32 = arith.constant 0 : i32
    %c0_i32_0 = arith.constant 0 : i32
    %c0_i32_1 = arith.constant 0 : i32
    return %c0_i32, %c0_i32_0 : i32, i32
  }
  func.func @transform_2(%arg0: i32) -> (i32, i32) {
    %c0_i32 = arith.constant 0 : i32
    %c0_i32_0 = arith.constant 0 : i32
    %c0_i32_1 = arith.constant 0 : i32
    return %c0_i32, %c0_i32_0 : i32, i32
  }
  func.func @transform_3(%arg0: i32) -> (i32, i32) {
    %c0_i32 = arith.constant 0 : i32
    %c0_i32_0 = arith.constant 0 : i32
    %c0_i32_1 = arith.constant 0 : i32
    return %c0_i32, %c0_i32_0 : i32, i32
  }
  func.func @transform_4(%arg0: i32) -> (i32, i32) {
    %c0_i32 = arith.constant 0 : i32
    %c0_i32_0 = arith.constant 0 : i32
    %c0_i32_1 = arith.constant 0 : i32
    return %c0_i32, %c0_i32_0 : i32, i32
  }
  func.func @transform_5(%arg0: i32) -> (i32, i32) {
    %c0_i32 = arith.constant 0 : i32
    %c0_i32_0 = arith.constant 0 : i32
    %c0_i32_1 = arith.constant 0 : i32
    return %c0_i32, %c0_i32_0 : i32, i32
  }
  func.func @transform_6(%arg0: i32) -> (i32, i32) {
    %c0_i32 = arith.constant 0 : i32
    %c0_i32_0 = arith.constant 0 : i32
    %c0_i32_1 = arith.constant 0 : i32
    return %c0_i32, %c0_i32_0 : i32, i32
  }
  func.func @transform_7(%arg0: i32) -> (i32, i32) {
    %c0_i32 = arith.constant 0 : i32
    %c0_i32_0 = arith.constant 0 : i32
    return %c0_i32, %arg0 : i32, i32
  }
}

</mosaic_0001>

<bundles_post_ra>
// kernel: tpu_custom_call.1
= control target key start
LH: loop header
LB: loop body
LE: loop exit
PB: predicated region body
PF: predicated region fallthrough
CT: control target
= control target key end

     0   :  { %vm74_vm0 = vcmask 130048   ;;  %v378_v3 = vmov 0   ;;  %s482_s0 = inlined_call_operand.vmem [shape: bf16[16,128], index: 0, kind: input, shape index: {}]   ;;  %s483_s1 = inlined_call_operand.vmem [shape: bf16[32,16], index: 1, kind: input, shape index: {}]   ;;  %s484_s2 = inlined_call_operand.vmem [shape: f32[32,1], index: 2, kind: input, shape index: {}]   ;;  %s485_s3 = inlined_call_operand.vmem [shape: bf16[32,32], index: 3, kind: input, shape index: {}]   ;;  %s486_s4 = inlined_call_operand.vmem [shape: f32[32,1], index: 4, kind: input, shape index: {}]   ;;  %s487_s5 = inlined_call_operand.vmem [shape: bf16[4,32], index: 5, kind: input, shape index: {}]   ;;  %s488_s6 = inlined_call_operand.vmem [shape: f32[4,1], index: 6, kind: input, shape index: {}]   ;;  %s489_s7 = inlined_call_operand.hbm [shape: f32[4,128], index: 7, kind: output, shape index: {}]  }
   0x1   :  { %v349_v0 = vld [vmem:[%s482_s0] sm:$0xff]   ;;  %v351_v2 = vld [vmem:[%s483_s1 + $0x8] sm:$0xff]   ;;  %347 = vset.pattern.permute.xlu0 %v378_v3  ;;  %v36_v5 = vld [vmem:[%s484_s2 + $0x10] sm:$0xff]  ;;  %348 = vset.pattern.permute.xlu1 %v378_v3 }
   0x2   :  { %v350_v1 = vld [vmem:[%s483_s1] sm:$0xff]   ;;  %321 = vmatprep.subr.bf16.mxu0 %v349_v0  ;;  %v35_v6 = vld [vmem:[%s484_s2 + $0x8] sm:$0xff]  ;;  %50 = vperm.xlu1 %348, %v36_v5   ;;  %v37_v7 = vld [vmem:[%s484_s2 + $0x18] sm:$0xff] }
   0x3   :  { %322 = vmatpush3.bf16.msra.mxu0 %v349_v0  ;;  %323 = vmatprep.mubr.msk.bf16.mxu0 %vm74_vm0, %v350_v1  ;;  %v34_v4 = vld [vmem:[%s484_s2] sm:$0xff] }
   0x4   :  { %40 = vperm.xlu0 %347, %v34_v4  }
   0x6   :  { %324 = vmatmul.mubr.msk.bf16.vlgmr.msra.gmra.mrb[0].mxu0 %vm74_vm0, %v351_v2 }
   0x7   :  { %12 = vsyncpa [#allocation3], 0  ;;  %v138_v8 = vld [vmem:[%s486_s4] sm:$0xff]  ;;  %55 = vperm.xlu1 %348, %v37_v7   ;;  %v139_v9 = vld [vmem:[%s486_s4 + $0x8] sm:$0xff]  ;;  %vm174_vm1 = vcmask 261120   ;;  %v379_v33 = vmov 0.0  }
   0x8   :  { %45 = vperm.xlu0 %347, %v35_v6   ;;  %v140_v10 = vld [vmem:[%s486_s4 + $0x10] sm:$0xff]  ;;  %v141_v11 = vld [vmem:[%s486_s4 + $0x18] sm:$0xff]  ;;  %v235_v12 = vld [vmem:[%s488_s6] sm:$0xf]  ;;  %335 = vmatprep.subr.bf16.mxu0 %v379_v33  ;;  %vm380_vm2 = vmmov 0   ;;  %s381_s25 = smov [#allocation2]  }
   0x9   :  { %v352_v13 = vld [vmem:[%s485_s3] sm:$0xff]   ;;  %v353_v32 = vld [vmem:[%s485_s3 + $0x8] sm:$0xff]   ;;  %339 = vmatprep.mubr.msk.bf16.mxu0 %vm380_vm2, %v379_v33  ;;  %s293_s26 = sshll.u32 %s381_s25, 4  ;;  %s294_s26 = int_to_ptr.vmem [resolvable:$true] %s293_s26 }
   0xa   :  { %331 = vmatprep.mubr.msk.bf16.mxu1 %vm174_vm1, %v352_v13  ;;  %v234_v52 = vld [vmem:[%s487_s5] sm:$0x3]  ;;  %s354_s27 = scalar_lea.vmem %s294_s26, 64  ;;  %p359_p1 = scmp.lt.s32.totalorder %s294_s26, %s294_s26 }
   0xb   :  { %151 = vperm.xlu1 %348, %v139_v9   ;;  %p355_p0 = scmp.ne.s32.totalorder %s294_s26, %s354_s27  ;;  %p360_p2 = scmp.lt.s32.totalorder %s354_s27, %s354_s27 }
   0xc   :  { %146 = vperm.xlu0 %347, %v138_v8  }
   0xd   :  { %p361_p3 = por %p360_p2, %p359_p1 }
   0xf   :  { %161 = vperm.xlu1 %348, %v141_v11   ;;  %p362_p4 = pnand %p361_p3, %p355_p0 }
  0x10   :  { %156 = vperm.xlu0 %347, %v140_v10  }
  0x14   :  { %240 = vperm.xlu0 %347, %v235_v12  }
  0x81   :  { %v51_v14 = vpop.permute.xlu1 %50 }
  0x83   :  { %v41_v15 = vpop.permute.xlu0 %40 }
  0x86   :  { %v56_v19 = vpop.permute.xlu1 %55 }
  0x87   :  { %v46_v22 = vpop.permute.xlu0 %45 }
  0x8a   :  { %v152_v35 = vpop.permute.xlu1 %151 }
  0x8b   :  { %v147_v34 = vpop.permute.xlu0 %146 }
  0x8e   :  { %v162_v40 = vpop.permute.xlu1 %161 }
  0x8f   :  { %v157_v36 = vpop.permute.xlu0 %156 }
  0x93   :  { %v241_v53 = vpop.permute.xlu0 %240 }
  0xd9   :  { %v325_v16 = vpop.f32.mrb[0].mxu0 }
  0xda   :  { %v124_v17 = vadd.f32 %v325_v16, %v51_v14  ;;  %v115_v18 = vpop.f32.mrb[1].mxu0 }
  0xdb   :  { %v116_v20 = vadd.f32 %v115_v18, %v41_v15  ;;  %v326_v21 = vpop.f32.mrb[2].mxu0 }
  0xdc   :  { %v127_v23 = vadd.f32 %v326_v21, %v56_v19  ;;  %v118_v24 = vpop.f32.mrb[3].mxu0  ;;  %v132_v26 = vmax.f32 %v124_v17, 0.0 }
  0xdd   :  { %v119_v25 = vadd.f32 %v118_v24, %v46_v22  ;;  %v130_v28 = vmax.f32 %v116_v20, 0.0 }
  0xde   :  { %v133_v27 = vmax.f32 %v127_v23, 0.0 }
  0xdf   :  { %v131_v29 = vmax.f32 %v119_v25, 0.0 }
  0xe0   :  { %v143_v30 = vpack.c.bf16 %v133_v27, %v132_v26 }
  0xe1   :  { %v142_v31 = vpack.c.bf16 %v131_v29, %v130_v28 }
  0xe3   :  { %327 = vmatprep.subr.bf16.mxu1 %v142_v31 }
  0xe4   :  { %328 = vmatpush3.bf16.msra.mxu1 %v142_v31 }
  0xe5   :  { %329 = vmatprep.subr.bf16.mxu1 %v143_v30 }
  0xe8   :  { %330 = vmatpush3.bf16.msra.mxu1 %v143_v30 }
  0xeb   :  { %332 = vmatmul.mubr.msk.bf16.vlgmr.msra.gmra.mrb[0].mxu1 %vm174_vm1, %v353_v32 }
 0x1be   :  { %v333_v37 = vpop.f32.mrb[0].mxu1 }
 0x1bf   :  { %v224_v38 = vadd.f32 %v333_v37, %v157_v36  ;;  %v215_v39 = vpop.f32.mrb[1].mxu1 }
 0x1c0   :  { %v216_v41 = vadd.f32 %v215_v39, %v147_v34  ;;  %v334_v42 = vpop.f32.mrb[2].mxu1 }
 0x1c1   :  { %v227_v43 = vadd.f32 %v334_v42, %v162_v40  ;;  %v218_v44 = vpop.f32.mrb[3].mxu1  ;;  %v232_v46 = vmax.f32 %v224_v38, 0.0 }
 0x1c2   :  { %v219_v45 = vadd.f32 %v218_v44, %v152_v35  ;;  %v230_v48 = vmax.f32 %v216_v41, 0.0 }
 0x1c3   :  { %v233_v47 = vmax.f32 %v227_v43, 0.0 }
 0x1c4   :  { %v231_v49 = vmax.f32 %v219_v45, 0.0 }
 0x1c5   :  { %v237_v50 = vpack.c.bf16 %v233_v47, %v232_v46 }
 0x1c6   :  { %v236_v51 = vpack.c.bf16 %v231_v49, %v230_v48 }
 0x1c8   :  { %336 = vmatpush3.bf16.msra.mxu0 %v236_v51 }
 0x1c9   :  { %337 = vmatprep.subr.bf16.mxu0 %v379_v33 }
 0x1cc   :  { %338 = vmatpush3.bf16.msra.mxu0 %v237_v50 }
 0x1cf   :  { %340 = vmatmul.mubr.msk.bf16.vlgmr.msra.gmra.mrb[4].mxu0 %vm174_vm1, %v234_v52 }
 0x2a2   :  { %v280_v54 = vpop.f32.mrb[4].mxu0 }
 0x2a3   :  { %v281_v55 = vadd.f32 %v280_v54, %v241_v53  ;;  %v341_v56 = vpop.f32.mrb[5].mxu0 }
 0x2a4   :  { %v283_v57 = vpop.f32.mrb[6].mxu0 }
 0x2a5   :  { %286 = vst [vmem:[#allocation2] sm:$0xf] %v281_v55  ;;  %v342_v58 = vpop.f32.mrb[7].mxu0 }
 0x2a6   :  { %365 = shalt.err (!%p362_p4)
}
 0x2a7   :  { %s366_s29 = scalar_lea.hbm %s489_s7, 64 }
 0x2a8   :  { %p367_p5 = scmp.ne.s32.totalorder %s489_s7, %s366_s29  ;;  %p370_p6 = scmp.lt.u32.totalorder %s366_s29, %s489_s7 }
 0x2aa   :  { %p372_p7 = pnand %p370_p6, %p367_p5 }
 0x2ac   :  { %375 = shalt.err (!%p372_p7)
}
 0x2ad   :  { %296 = dma.vmem_to_hbm [thread:$0]  %s294_s26, 64, %s489_s7, [#allocation3]  }
 0x2ae   :  { %376 = dma.done.wait [#allocation3], 64  }
 0x2af   :  { %377 = vsyncadd [#allocation3], 4294967232 }
 0x2b0   :  { %300 = vsyncpa [#allocation3], 1 }

</bundles_post_ra>
